<compile_context>
chip_gen: v6e
topology: v6e:2x2x1
jax: 0.10.0
libtpu: 0.0.40
codegen_flags: <defaults>
</compile_context>

<pallas_src>
import functools

import jax
import jax.numpy as jnp
from jax.experimental import pallas as pl
from jax.experimental.pallas import tpu as pltpu

HEAD_PAD = 128  # each head (mu / std) occupies one full 128-lane slab


def actor_kernel(x_ref, w1_ref, b1_ref, wh_ref, bh_ref, out_ref, *, num_outputs):
    O = num_outputs
    P = HEAD_PAD

    # fc1 + relu: bf16 MXU push, f32 accumulate; elementwise math in f32.
    h = jnp.dot(x_ref[...], w1_ref[...], preferred_element_type=jnp.float32)
    h = jnp.maximum(h + b1_ref[...], 0.0)                          # [TB, H] f32

    # Fused, lane-dense head projection: [mu | std] packed into 2*128 lanes.
    heads = jnp.dot(h.astype(wh_ref.dtype), wh_ref[...],
                    preferred_element_type=jnp.float32) + bh_ref[...]  # [TB, 2P]

    mu_half = heads[:, :P]    # 128-lane-aligned slices: no cross-lane shuffles
    sd_half = heads[:, P:]

    # fc_mu -> tanh(logits + 1) / 2   (tanh goes to the EUP slot)
    mu = jnp.tanh(mu_half + 1.0) * 0.5                             # [TB, P]

    # fc_std -> softmax over the logical O output columns. Padded lanes are
    # masked to -inf before the row max so they contribute exp(-inf) = 0 to
    # the denominator. Exact divide -> rows sum to exactly 1.
    lane = jax.lax.broadcasted_iota(jnp.int32, sd_half.shape, dimension=1)
    logits = jnp.where(lane < O, sd_half, -jnp.inf)
    z = logits - jnp.max(logits, axis=-1, keepdims=True)
    e = jnp.exp(z)
    sd = e / jnp.sum(e, axis=-1, keepdims=True)                    # [TB, P]

    # Two unmasked, 128-aligned stores into the packed [TB, 2P] output slab.
    out_ref[:, :P] = mu.astype(out_ref.dtype)
    out_ref[:, P:] = sd.astype(out_ref.dtype)


def _round_up(v, m):
    return ((v + m - 1) // m) * m


def actor_forward(x, w1, b1, wmu, bmu, wstd, bstd, *,
                  block_b=512, compute_dtype=jnp.bfloat16):
    B, D = x.shape
    H = w1.shape[1]
    O = wmu.shape[1]
    P = HEAD_PAD
    assert O <= P, "num_outputs must fit in one 128-lane slab"

    # ---- wrapper-side layout plumbing (pure data movement, no compute) ------
    # Fuse + zero-pad the heads so the kernel output is lane-dense:
    #   lanes [0, P)   -> mu head  (cols [0, O) real, rest zero padding)
    #   lanes [P, 2P)  -> std head (cols [P, P+O) real, rest zero padding)
    wh = jnp.zeros((H, 2 * P), jnp.float32)
    wh = wh.at[:, :O].set(wmu).at[:, P:P + O].set(wstd)
    bh = jnp.zeros((1, 2 * P), jnp.float32)
    bh = bh.at[:, :O].set(bmu).at[:, P:P + O].set(bstd)

    # bf16 matmul operands (halved HBM->VMEM DMA bytes, native MXU path);
    # biases stay f32 and all post-matmul elementwise math is f32 (v5e-safe).
    x_c = x.astype(compute_dtype)
    w1_c = w1.astype(compute_dtype)
    wh_c = wh.astype(compute_dtype)
    b1_f = b1.astype(jnp.float32)
    bh_f = bh.astype(jnp.float32)

    # ---- batch tiling --------------------------------------------------------
    # Big tiles amortize the ~0.35us/grid-step overhead; for large B keep at
    # least two tiles so the "parallel" axis can shard across v7x's two TCs.
    # Pad B to a tile multiple so every tile / store is full and unmasked.
    if B <= block_b:
        TB = _round_up(B, 8)
    else:
        TB = block_b
    if B >= 1024:
        TB = min(TB, _round_up((B + 1) // 2, 8))
    B_pad = _round_up(B, TB)
    if B_pad != B:
        x_c = jnp.pad(x_c, ((0, B_pad - B), (0, 0)))
    grid = (B_pad // TB,)

    # VMEM budget: double-buffered x/out tiles + resident weights + headroom.
    # (Covers v5e's 16 MiB default scoped limit; capped at 64 MiB for v7x.)
    # TODO(synk): on v7x at large H, single-buffer the constant-index weight
    # specs (pipeline_mode=pl.Buffered(1)) to halve their VMEM residency.
    elt_in = jnp.dtype(compute_dtype).itemsize
    vmem_bytes = (2 * TB * D * elt_in                     # x tile (2 bufs)
                  + 2 * TB * 2 * P * 4                    # out tile (2 bufs)
                  + 2 * (D * H + H * 2 * P) * elt_in      # weights (2 bufs)
                  + 2 * (H + 2 * P) * 4                   # biases
                  + (2 << 20))                            # headroom
    vmem_limit = int(min(64 << 20, max(vmem_bytes, 16 << 20)))

    cost = pl.CostEstimate(
        flops=2 * B_pad * D * H + 2 * B_pad * H * (2 * P),
        transcendentals=2 * B_pad * P,                    # tanh + exp per lane
        bytes_accessed=(x_c.size * elt_in + w1_c.size * elt_in
                        + wh_c.size * elt_in + b1_f.size * 4 + bh_f.size * 4
                        + B_pad * 2 * P * 4),
    )

    out = pl.pallas_call(
        functools.partial(actor_kernel, num_outputs=O),
        grid=grid,
        in_specs=[
            pl.BlockSpec((TB, D), lambda i: (i, 0)),        # x: tiled over batch
            pl.BlockSpec((D, H), lambda i: (0, 0)),         # w1: VMEM-resident
            pl.BlockSpec((1, H), lambda i: (0, 0)),         # b1
            pl.BlockSpec((H, 2 * P), lambda i: (0, 0)),     # fused/padded head W
            pl.BlockSpec((1, 2 * P), lambda i: (0, 0)),     # fused/padded head b
        ],
        out_specs=pl.BlockSpec((TB, 2 * P), lambda i: (i, 0)),
        out_shape=jax.ShapeDtypeStruct((B_pad, 2 * P), jnp.float32),
        compiler_params=pltpu.CompilerParams(
            dimension_semantics=("parallel",),
            vmem_limit_bytes=vmem_limit,
        ),
        cost_estimate=cost,
    )(x_c, w1_c, b1_f, wh_c, bh_f)

    # Unpack: drop batch padding and the zero-padded lanes of each head.
    return out[:B, :O], out[:B, P:P + O]


def init_params(key, num_inputs, hidden_size, num_outputs):
    """Deterministic init mimicking nn.Linear's U(-1/sqrt(fan_in), 1/sqrt(fan_in))."""
    ks = jax.random.split(key, 6)

    def lin(kw, kb, fan_in, fan_out):
        bound = 1.0 / jnp.sqrt(jnp.float32(fan_in))
        w = jax.random.uniform(kw, (fan_in, fan_out), jnp.float32, -bound, bound)
        b = jax.random.uniform(kb, (1, fan_out), jnp.float32, -bound, bound)
        return w, b

    w1, b1 = lin(ks[0], ks[1], num_inputs, hidden_size)
    wmu, bmu = lin(ks[2], ks[3], hidden_size, num_outputs)
    wstd, bstd = lin(ks[4], ks[5], hidden_size, num_outputs)
    return w1, b1, wmu, bmu, wstd, bstd


def _reference(x, w1, b1, wmu, bmu, wstd, bstd):
    h = jnp.maximum(x @ w1 + b1, 0.0)
    mu = jnp.tanh(h @ wmu + bmu + 1.0) / 2.0
    sd = jax.nn.softmax(h @ wstd + bstd, axis=-1)
    return mu, sd


if __name__ == "__main__":
    key = jax.random.PRNGKey(0)
    fwd = jax.jit(actor_forward)

    # Case 1: module defaults (num_outputs=1) -> softmax is degenerate (== 1.0).
    # Case 2: num_outputs=4 and a batch that is not a multiple of 8, to exercise
    #         the lane-pad masking and the batch-padding paths.
    cases = [
        dict(batch=8, num_inputs=16, hidden_size=32, num_outputs=1),
        dict(batch=10, num_inputs=16, hidden_size=32, num_outputs=4),
    ]
    for c in cases:
        k_x, k_p, key = jax.random.split(key, 3)
        x = jax.random.normal(k_x, (c["batch"], c["num_inputs"]), jnp.float32)
        params = init_params(k_p, c["num_inputs"], c["hidden_size"],
                             c["num_outputs"])

        mu, sd = fwd(x, *params)
        jax.block_until_ready((mu, sd))

        mu_ref, sd_ref = _reference(x, *params)
        assert mu.shape == (c["batch"], c["num_outputs"])
        assert sd.shape == (c["batch"], c["num_outputs"])
        # bf16 matmul operands -> compare against the f32 reference at ~1e-2.
        assert jnp.allclose(mu, mu_ref, atol=2e-2), f"mu mismatch for {c}"
        assert jnp.allclose(sd, sd_ref, atol=2e-2), f"sd mismatch for {c}"
        # Exact-divide softmax: every row sums to exactly 1 (padding masked out).
        assert jnp.allclose(sd.sum(axis=-1), 1.0, atol=1e-5), f"softmax norm {c}"

    print("KERNEL_OK")
</pallas_src>

<mosaic_0001>
module attributes {stable_mosaic.version = 11 : i64} {
  func.func @actor_kernel(%arg0: i32, %arg1: memref<8x16xbf16, #tpu.memory_space<vmem>>, %arg2: memref<16x32xbf16, #tpu.memory_space<vmem>>, %arg3: memref<1x32xf32, #tpu.memory_space<vmem>>, %arg4: memref<32x256xbf16, #tpu.memory_space<vmem>>, %arg5: memref<1x256xf32, #tpu.memory_space<vmem>>, %arg6: memref<8x256xf32, #tpu.memory_space<vmem>>) attributes {dimension_semantics = [#tpu.dimension_semantics<parallel>], iteration_bounds = array<i64: 1>, scalar_prefetch = 0 : i64, scratch_operands = 0 : i64, tpu.core_type = #tpu.core_type<tc>, window_params = [{transform_indices = @transform_0, window_bounds = array<i64: 8, 16>}, {pipeline_mode = #tpu.pipeline_mode<synchronous>, transform_indices = @transform_1, window_bounds = array<i64: 16, 32>}, {pipeline_mode = #tpu.pipeline_mode<synchronous>, transform_indices = @transform_2, window_bounds = array<i64: 1, 32>}, {pipeline_mode = #tpu.pipeline_mode<synchronous>, transform_indices = @transform_3, window_bounds = array<i64: 32, 256>}, {pipeline_mode = #tpu.pipeline_mode<synchronous>, transform_indices = @transform_4, window_bounds = array<i64: 1, 256>}, {transform_indices = @transform_5, window_bounds = array<i64: 8, 256>}]} {
    %c0 = arith.constant 0 : index
    %c0_0 = arith.constant 0 : index
    %0 = vector.load %arg1[%c0, %c0_0] : memref<8x16xbf16, #tpu.memory_space<vmem>>, vector<8x16xbf16>
    %c0_1 = arith.constant 0 : index
    %c0_2 = arith.constant 0 : index
    %1 = vector.load %arg2[%c0_1, %c0_2] : memref<16x32xbf16, #tpu.memory_space<vmem>>, vector<16x32xbf16>
    %cst = arith.constant dense<0.000000e+00> : vector<8x32xf32>
    %2 = tpu.matmul %0, %1, %cst {dimension_numbers = #tpu.dot_dimension_numbers<[1], [0], [0], [1], [0, 0, 1, 1], [], []>} : vector<8x16xbf16>, vector<16x32xbf16>, vector<8x32xf32> -> vector<8x32xf32>
    %c0_3 = arith.constant 0 : index
    %c0_4 = arith.constant 0 : index
    %3 = vector.load %arg3[%c0_3, %c0_4] : memref<1x32xf32, #tpu.memory_space<vmem>>, vector<1x32xf32>
    %4 = vector.broadcast %3 : vector<1x32xf32> to vector<8x32xf32>
    %5 = arith.addf %2, %4 : vector<8x32xf32>
    %cst_5 = arith.constant 0.000000e+00 : f32
    %6 = vector.broadcast %cst_5 : f32 to vector<8x32xf32>
    %7 = arith.maximumf %5, %6 : vector<8x32xf32>
    %8 = arith.truncf %7 : vector<8x32xf32> to vector<8x32xbf16>
    %c0_6 = arith.constant 0 : index
    %c0_7 = arith.constant 0 : index
    %9 = vector.load %arg4[%c0_6, %c0_7] : memref<32x256xbf16, #tpu.memory_space<vmem>>, vector<32x256xbf16>
    %cst_8 = arith.constant dense<0.000000e+00> : vector<8x256xf32>
    %10 = tpu.matmul %8, %9, %cst_8 {dimension_numbers = #tpu.dot_dimension_numbers<[1], [0], [0], [1], [0, 0, 1, 1], [], []>} : vector<8x32xbf16>, vector<32x256xbf16>, vector<8x256xf32> -> vector<8x256xf32>
    %c0_9 = arith.constant 0 : index
    %c0_10 = arith.constant 0 : index
    %11 = vector.load %arg5[%c0_9, %c0_10] : memref<1x256xf32, #tpu.memory_space<vmem>>, vector<1x256xf32>
    %12 = vector.broadcast %11 : vector<1x256xf32> to vector<8x256xf32>
    %13 = arith.addf %10, %12 : vector<8x256xf32>
    %14 = vector.extract_strided_slice %13 {offsets = [0, 0], sizes = [8, 128], strides = [1, 1]} : vector<8x256xf32> to vector<8x128xf32>
    %15 = vector.extract_strided_slice %13 {offsets = [0, 128], sizes = [8, 128], strides = [1, 1]} : vector<8x256xf32> to vector<8x128xf32>
    %cst_11 = arith.constant 1.000000e+00 : f32
    %16 = vector.broadcast %cst_11 : f32 to vector<8x128xf32>
    %17 = arith.addf %14, %16 : vector<8x128xf32>
    %18 = math.tanh %17 : vector<8x128xf32>
    %cst_12 = arith.constant 5.000000e-01 : f32
    %19 = vector.broadcast %cst_12 : f32 to vector<8x128xf32>
    %20 = arith.mulf %18, %19 : vector<8x128xf32>
    %21 = tpu.iota {dimensions = array<i32: 1>} : vector<8x128xi32>
    %c1_i32 = arith.constant 1 : i32
    %22 = vector.broadcast %c1_i32 : i32 to vector<8x128xi32>
    %23 = arith.cmpi slt, %21, %22 : vector<8x128xi32>
    %cst_13 = arith.constant 0xFF800000 : f32
    %24 = vector.broadcast %cst_13 : f32 to vector<8x128xf32>
    %25 = arith.select %23, %15, %24 : vector<8x128xi1>, vector<8x128xf32>
    %cst_14 = arith.constant dense<0xFF800000> : vector<8xf32>
    %26 = vector.multi_reduction <maximumf>, %25, %cst_14 [1] : vector<8x128xf32> to vector<8xf32>
    %27 = vector.shape_cast %26 : vector<8xf32> to vector<8x1xf32>
    %28 = vector.broadcast %27 : vector<8x1xf32> to vector<8x128xf32>
    %29 = arith.subf %25, %28 : vector<8x128xf32>
    %30 = math.exp %29 : vector<8x128xf32>
    %cst_15 = arith.constant dense<0.000000e+00> : vector<8xf32>
    %31 = vector.multi_reduction <add>, %30, %cst_15 [1] : vector<8x128xf32> to vector<8xf32>
    %32 = vector.shape_cast %31 : vector<8xf32> to vector<8x1xf32>
    %33 = vector.broadcast %32 : vector<8x1xf32> to vector<8x128xf32>
    %34 = arith.divf %30, %33 : vector<8x128xf32>
    %c0_16 = arith.constant 0 : index
    %c0_17 = arith.constant 0 : index
    %35 = vector.load %arg6[%c0_16, %c0_17] : memref<8x256xf32, #tpu.memory_space<vmem>>, vector<8x128xf32>
    tpu.vector_store %arg6[%c0_16, %c0_17], %20 {strides = array<i32>} : memref<8x256xf32, #tpu.memory_space<vmem>>, vector<8x128xf32>,
    %c0_18 = arith.constant 0 : index
    %c128 = arith.constant 128 : index
    %36 = vector.load %arg6[%c0_18, %c128] : memref<8x256xf32, #tpu.memory_space<vmem>>, vector<8x128xf32>
    tpu.vector_store %arg6[%c0_18, %c128], %34 {strides = array<i32>} : memref<8x256xf32, #tpu.memory_space<vmem>>, vector<8x128xf32>,
    return
  }
  func.func @transform_0(%arg0: i32) -> (i32, i32) {
    %c0_i32 = arith.constant 0 : i32
    %c0_i32_0 = arith.constant 0 : i32
    return %arg0, %c0_i32 : i32, i32
  }
  func.func @transform_1(%arg0: i32) -> (i32, i32) {
    %c0_i32 = arith.constant 0 : i32
    %c0_i32_0 = arith.constant 0 : i32
    %c0_i32_1 = arith.constant 0 : i32
    return %c0_i32, %c0_i32_0 : i32, i32
  }
  func.func @transform_2(%arg0: i32) -> (i32, i32) {
    %c0_i32 = arith.constant 0 : i32
    %c0_i32_0 = arith.constant 0 : i32
    %c0_i32_1 = arith.constant 0 : i32
    return %c0_i32, %c0_i32_0 : i32, i32
  }
  func.func @transform_3(%arg0: i32) -> (i32, i32) {
    %c0_i32 = arith.constant 0 : i32
    %c0_i32_0 = arith.constant 0 : i32
    %c0_i32_1 = arith.constant 0 : i32
    return %c0_i32, %c0_i32_0 : i32, i32
  }
  func.func @transform_4(%arg0: i32) -> (i32, i32) {
    %c0_i32 = arith.constant 0 : i32
    %c0_i32_0 = arith.constant 0 : i32
    %c0_i32_1 = arith.constant 0 : i32
    return %c0_i32, %c0_i32_0 : i32, i32
  }
  func.func @transform_5(%arg0: i32) -> (i32, i32) {
    %c0_i32 = arith.constant 0 : i32
    %c0_i32_0 = arith.constant 0 : i32
    return %arg0, %c0_i32 : i32, i32
  }
}

</mosaic_0001>

<bundles_post_ra>
// kernel: actor_forward.1
= control target key start
LH: loop header
LB: loop body
LE: loop exit
PB: predicated region body
PF: predicated region fallthrough
CT: control target
= control target key end

     0   :  { %v218_v0 = vmov 0.0   ;;  %vm219_vm0 = vmmov 0   ;;  %vm37_vm1 = vcmask 130048   ;;  %v220_v7 = vmov 0   ;;  %s281_s1 = inlined_call_operand.vmem [shape: bf16[16,32], index: 1, kind: input, shape index: {}]   ;;  %s282_s0 = inlined_call_operand.vmem [shape: bf16[8,16], index: 0, kind: input, shape index: {}]   ;;  %s283_s3 = inlined_call_operand.vmem [shape: bf16[32,256], index: 3, kind: input, shape index: {}]   ;;  %s284_s2 = inlined_call_operand.vmem [shape: f32[1,32], index: 2, kind: input, shape index: {}]   ;;  %s285_s4 = inlined_call_operand.vmem [shape: f32[1,256], index: 4, kind: input, shape index: {}]   ;;  %s286_s5 = inlined_call_operand.vmem [shape: f32[8,256], index: 5, kind: output, shape index: {}]  }
   0x1   :  { %196 = vmatprep.subr.bf16.mxu0 %v218_v0  ;;  %v205_v1 = vld [vmem:[%s281_s1] sm:$0xff]   ;;  %198 = vmatprep.mubr.msk.bf16.mxu0 %vm219_vm0, %v218_v0  ;;  %v206_v3 = vld [vmem:[%s283_s3 + $0x14] ss:$8 sps:$4 sm:$0xff]   ;;  %v208_v4 = vld [vmem:[%s283_s3 + $0x10] ss:$8 sps:$4 sm:$0xff]   ;;  %vm119_vm2 = vcmask 261120   ;;  %v89_v16 = vlaneseq }
   0x2   :  { %197 = vmatpush3.bf16.msra.mxu0 %v205_v1  ;;  %v21_v2 = vld [vmem:[%s282_s0] sm:$0xf]  ;;  %135 = vmatprep.subr.bf16.mxu1 %v206_v3  ;;  %v209_v5 = vld [vmem:[%s283_s3 + $0x4] ss:$8 sps:$4 sm:$0xff]  }
   0x3   :  { %136 = vmatpush1.bf16.msra.mxu1 %v208_v4  ;;  %v211_v6 = vld [vmem:[%s283_s3] ss:$8 sps:$4 sm:$0xff]   ;;  %155 = vmatprep.mubr.bf16.mxu1 %v220_v7  ;;  %v90_v17 = vshrl.u32 %v89_v16, 7  ;;  %v168_v22 = vand.u32 127, %v89_v16 }
   0x4   :  { %137 = vmatprep.subr.bf16.mxu1 %v209_v5  ;;  %v186_v8 = vld [vmem:[%s284_s2] ss:$0 sm:$0xff] }
   0x5   :  { %199 = vmatmul.mubr.msk.bf16.vlgmr.msra.gmra.mxu0 %vm37_vm1, %v21_v2  ;;  %v91_v18 = vsub.s32 0, %v90_v17  ;;  %v87_v19 = vld [vmem:[%s285_s4] sm:$0x3]  ;;  %v95_v20 = vsub.s32 1, %v90_v17  ;;  %vm169_vm3 = vcmp.lt.s32.totalorder %v168_v22, 1 }
   0x7   :  { %138 = vmatpush1.bf16.msra.mxu1 %v211_v6  ;;  %v92_v21 = vrot.slane %v87_v19, %v91_v18  ;;  %v96_v23 = vrot.slane %v87_v19, %v95_v20 }
  0xc5   :  { %v75_v9 = vpop.f32.mrf.mxu0 }
  0xc6   :  { %v76_v10 = vadd.f32 %v186_v8, %v75_v9 }
  0xc7   :  { %v200_v11 = vpop.f32.mrf.mxu0 }
  0xc8   :  { %v81_v12 = vmax.f32 %v76_v10, 0.0 }
  0xc9   :  { %v78_v13 = vpop.f32.mrf.mxu0 }
  0xca   :  { %v82_v14 = vpack.c.bf16 %v81_v12, %v81_v12 }
  0xcb   :  { %v201_v15 = vpop.f32.mrf.mxu0 }
  0xcc   :  { %193 = vmatmul.mubr.msk.bf16.vlgmr.msra.gmra.mxu1 %vm119_vm2, %v82_v14 }
 0x18c   :  { %v157_v24 = vpop.f32.mrf.mxu1 }
 0x18d   :  { %v158_v25 = vadd.f32 %v157_v24, %v92_v21 }
 0x18e   :  { %v159_v26 = vpop.f32.mrf.mxu1 }
 0x18f   :  { %v164_v27 = vadd.f32 1.0, %v158_v25  ;;  %v160_v28 = vadd.f32 %v159_v26, %v96_v23 }
 0x190   :  { %v161_v29 = vpop.f32.mrf.mxu1 }
 0x191   :  { %212 = vtanh.f32 %v164_v27  ;;  %v170_v30 = vsel %vm169_vm3, %v160_v28, -inf }
 0x192   :  { %v162_v31 = vpop.f32.mrf.mxu1  ;;  %171 = vmax.xlane.f32.xlu0 %v170_v30 }
 0x19e   :  { %v213_v32 = vpop.eup %212 }
 0x19f   :  { %v166_v33 = vmul.f32 0.5, %v213_v32 }
 0x1a1   :  { %180 = vst [vmem:[%s286_s5] sm:$0xff] %v166_v33 }
 0x21b   :  { %v172_v34 = vpop.xlane.xlu0 %171 }
 0x21c   :  { %v173_v35 = vsub.f32 %v170_v30, %v172_v34 }
 0x21e   :  { %v174_v36 = vmul.f32 1.442695, %v173_v35 }
 0x220   :  { %214 = vpow2.f32 %v174_v36 }
 0x22d   :  { %v215_v37 = vpop.eup %214 }
 0x22e   :  { %176 = vadd.xlane.f32.xlu0 %v215_v37 }
 0x2b7   :  { %v177_v38 = vpop.xlane.xlu0 %176 }
 0x2b8   :  { %216 = vrcp.f32 %v177_v38 }
 0x2c5   :  { %v217_v39 = vpop.eup %216 }
 0x2c6   :  { %v179_v40 = vmul.f32 %v217_v39, %v215_v37 }
 0x2c8   :  { %181 = vst [vmem:[%s286_s5 + $0x8] sm:$0xff] %v179_v40 }

</bundles_post_ra>
